<compile_context>
chip_gen: v7x
topology: tpu7x:2x2x1
jax: 0.10.0
libtpu: 0.0.40
codegen_flags: <defaults>
</compile_context>

<pallas_src>
import jax
import jax.numpy as jnp
from jax.experimental import pallas as pl
from jax.experimental.pallas import tpu as pltpu


def _gdn_scores_kernel(w_ref, e_ref, o_ref):
    # w_ref: (C, D)  -- VMEM-resident across the grid (constant index_map).
    # e_ref: (D, tn) -- streamed tile of the embeds, auto double-buffered.
    # o_ref: (C, tn) -- lane-dense output tile (tn on the 128-lane axis).
    o_ref[...] = jnp.dot(
        w_ref[...], e_ref[...], preferred_element_type=jnp.float32
    ).astype(o_ref.dtype)


def gdn_layer_forward(weight, embeds, *, tn=8192, min_pallas_nodes=256,
                      compute_dtype=None):
    """weight: (num_classes, embed_dim) f32, embeds: (embed_dim, num_nodes) f32.

    Returns (num_nodes, num_classes) f32, matching `scores.t()` in PyTorch.
    """
    num_classes, embed_dim = weight.shape
    embed_dim2, num_nodes = embeds.shape
    assert embed_dim == embed_dim2

    # Toy/small N: a single fused XLA dot beats pallas_call launch overhead.
    if num_nodes < min_pallas_nodes:
        return jnp.dot(weight, embeds, preferred_element_type=jnp.float32).T

    if compute_dtype is not None:
        # Optional bf16 inputs halve HBM bytes of the dominant embeds stream
        # (v6e/v7x); accumulation stays f32 inside the kernel and there is no
        # element-wise epilogue, so this is also safe on v5e.
        weight = weight.astype(compute_dtype)
        embeds = embeds.astype(compute_dtype)

    # Tile num_nodes; pad up to a multiple of the tile so the grid is exact.
    tn = max(128, min(tn, -(-num_nodes // 128) * 128))
    n_pad = -(-num_nodes // tn) * tn
    if n_pad != num_nodes:
        embeds = jnp.pad(embeds, ((0, 0), (0, n_pad - num_nodes)))
    grid = (n_pad // tn,)

    scores_cn = pl.pallas_call(
        _gdn_scores_kernel,
        out_shape=jax.ShapeDtypeStruct((num_classes, n_pad), jnp.float32),
        grid_spec=pltpu.PrefetchScalarGridSpec(
            num_scalar_prefetch=0,
            grid=grid,
            in_specs=[
                # Weight: constant block index -> stays resident in VMEM.
                pl.BlockSpec((num_classes, embed_dim), lambda i: (0, 0)),
                # Embeds: streamed along N, software-pipelined by Pallas.
                pl.BlockSpec((embed_dim, tn), lambda i: (0, i)),
            ],
            out_specs=pl.BlockSpec((num_classes, tn), lambda i: (0, i)),
        ),
        compiler_params=pltpu.CompilerParams(
            dimension_semantics=("parallel",),
        ),
    )(weight, embeds)

    # scores.t() per PyTorch: (num_nodes, num_classes).  Transpose done by XLA
    # outside the kernel so in-kernel stores stay lane-dense.
    return scores_cn[:, :num_nodes].T


def xavier_uniform(key, shape, dtype=jnp.float32):
    # Matches torch.nn.init.xavier_uniform_ for a 2-D weight (gain=1).
    fan_out, fan_in = shape
    limit = jnp.sqrt(6.0 / (fan_in + fan_out))
    return jax.random.uniform(key, shape, dtype=dtype, minval=-limit, maxval=limit)


def inter1_stub(embed_table, nodes):
    """Deterministic stand-in for the inter-relation aggregator `inter1`.

    embed_table: (embed_dim, total_nodes); nodes: (num_nodes,) int32.
    Returns (embed_dim, num_nodes) — same layout PyTorch's inter1 produces.
    """
    # TODO(synk): the real inter1 graph neighbor-aggregation is an external
    # module, so it stays plain-JAX glue here; fusing this gather into the
    # kernel (scalar-prefetched node ids) would halve HBM traffic but is out
    # of scope for this module's forward.
    return embed_table[:, nodes]


if __name__ == "__main__":
    num_classes = 2
    embed_dim = 32
    total_nodes = 4096
    num_nodes = 1024
    tn = 256  # small tile so the demo exercises a multi-step, pipelined grid

    key = jax.random.PRNGKey(0)
    k_w, k_e, k_n = jax.random.split(key, 3)

    # GDNLayer parameter: weight ~ xavier_uniform, shape (num_classes, embed_dim)
    weight = xavier_uniform(k_w, (num_classes, embed_dim))

    # Emulated inter1: embedding table + node index lookup (glue, not kernel).
    embed_table = jax.random.normal(k_e, (embed_dim, total_nodes), dtype=jnp.float32)
    nodes = jax.random.randint(k_n, (num_nodes,), 0, total_nodes)

    embeds1 = inter1_stub(embed_table, nodes)            # (embed_dim, num_nodes)

    out = gdn_layer_forward(weight, embeds1, tn=tn)      # (num_nodes, num_classes)
    out = jax.block_until_ready(out)

    # Sanity check against a high-precision plain-JAX reference of the PyTorch math.
    ref = jnp.dot(weight, embeds1, precision=jax.lax.Precision.HIGHEST).T
    assert out.shape == (num_nodes, num_classes)
    assert jnp.allclose(out, ref, atol=1e-4, rtol=1e-4)

    print("KERNEL_OK")
</pallas_src>

<mosaic_0001>
module attributes {stable_mosaic.version = 11 : i64} {
  func.func @_gdn_scores_kernel(%arg0: i32, %arg1: memref<2x32xf32, #tpu.memory_space<vmem>>, %arg2: memref<32x256xf32, #tpu.memory_space<vmem>>, %arg3: memref<2x256xf32, #tpu.memory_space<vmem>>) attributes {dimension_semantics = [#tpu.dimension_semantics<parallel>], iteration_bounds = array<i64: 4>, scalar_prefetch = 0 : i64, scratch_operands = 0 : i64, tpu.core_type = #tpu.core_type<tc>, window_params = [{pipeline_mode = #tpu.pipeline_mode<synchronous>, transform_indices = @transform_0, window_bounds = array<i64: 2, 32>}, {transform_indices = @transform_1, window_bounds = array<i64: 32, 256>}, {transform_indices = @transform_2, window_bounds = array<i64: 2, 256>}]} {
    %c0 = arith.constant 0 : index
    %c0_0 = arith.constant 0 : index
    %0 = vector.load %arg1[%c0, %c0_0] : memref<2x32xf32, #tpu.memory_space<vmem>>, vector<2x32xf32>
    %c0_1 = arith.constant 0 : index
    %c0_2 = arith.constant 0 : index
    %1 = vector.load %arg2[%c0_1, %c0_2] : memref<32x256xf32, #tpu.memory_space<vmem>>, vector<32x256xf32>
    %cst = arith.constant dense<0.000000e+00> : vector<2x256xf32>
    %2 = tpu.matmul %0, %1, %cst {dimension_numbers = #tpu.dot_dimension_numbers<[1], [0], [0], [1], [0, 0, 1, 1], [], []>} : vector<2x32xf32>, vector<32x256xf32>, vector<2x256xf32> -> vector<2x256xf32>
    %c0_3 = arith.constant 0 : index
    %c0_4 = arith.constant 0 : index
    %3 = vector.load %arg3[%c0_3, %c0_4] : memref<2x256xf32, #tpu.memory_space<vmem>>, vector<2x256xf32>
    tpu.vector_store %arg3[%c0_3, %c0_4], %2 {strides = array<i32>} : memref<2x256xf32, #tpu.memory_space<vmem>>, vector<2x256xf32>,
    return
  }
  func.func @transform_0(%arg0: i32) -> (i32, i32) {
    %c0_i32 = arith.constant 0 : i32
    %c0_i32_0 = arith.constant 0 : i32
    %c0_i32_1 = arith.constant 0 : i32
    return %c0_i32, %c0_i32_0 : i32, i32
  }
  func.func @transform_1(%arg0: i32) -> (i32, i32) {
    %c0_i32 = arith.constant 0 : i32
    %c0_i32_0 = arith.constant 0 : i32
    return %c0_i32, %arg0 : i32, i32
  }
  func.func @transform_2(%arg0: i32) -> (i32, i32) {
    %c0_i32 = arith.constant 0 : i32
    %c0_i32_0 = arith.constant 0 : i32
    return %c0_i32, %arg0 : i32, i32
  }
}

</mosaic_0001>

<bundles_post_ra>
// kernel: tpu_custom_call.1
= control target key start
LH: loop header
LB: loop body
LE: loop exit
PB: predicated region body
PF: predicated region fallthrough
CT: control target
= control target key end

     0   :  { %7 = vsyncpa [#allocation3], 0  ;;  %s806_s0 = inlined_call_operand.hbm [shape: f32[2,32], index: 0, kind: input, shape index: {}]   ;;  %s807_s1 = inlined_call_operand.hbm [shape: f32[32,1024], index: 1, kind: input, shape index: {}]   ;;  %s808_s2 = inlined_call_operand.hbm [shape: f32[2,1024], index: 2, kind: output, shape index: {}]  }
   0x1   :  { %8 = vsyncpa [#allocation6], 0 }
   0x2   :  { %10 = vsyncpa [#allocation6 + $0x1], 0 }
   0x3   :  { %11 = vsyncpa [#allocation4], 0 }
   0x4   :  { %13 = vsyncpa [#allocation4 + $0x1], 0  ;;  %s611_s9 = smov 0   ;;  %s613_s10 = smov 0  }
   0x5   :  { %s615_s11 = smov 0   ;;  %s617_s12 = smov 0  }
   0x6 LB: > { %s632_s13 = sadd.s32 4294967295, %s587_s12   ;;  %s370_s14 = sadd.s32 4294967294, %s587_s12   ;;  %s587_s12 = sphi %s617_s12, %s831_s12   ;;  %s583_s11 = sphi %s615_s11, %s830_s11   ;;  %s579_s10 = sphi %s613_s10, %s829_s10   ;;  %s575_s9 = sphi %s611_s9, %s828_s9  }
   0x7   : > { %s636_s15 = sadd.s32 1, %s587_s12   ;;  %s47_s16 = sadd.s32 1, %s583_s11 }
   0x8   : > { %s44_s17 = ssub.s32 %s587_s12, %s636_s15  ;;  %p54_p0 = scmp.ne.s32.totalorder %s583_s11, %s579_s10 }
   0x9   : > { %p45_p1 = scmp.eq.s32.totalorder %s44_s17, 0  ;;  %p55_p2 = scmp.eq.s32.totalorder %s587_s12, 0 }
   0xa   : > { %p60_p3 = scmp.ne.s32.totalorder %s579_s10, %s575_s9  ;;  %p809_p4 = scmp.eq.s32.totalorder %s632_s13, 0 }
   0xb   : > { %s648_s18 = scalar_select %p45_p1, %s583_s11, %s47_s16  }
   0xc   : > { %p650_p5 = por %p55_p2, %p54_p0  ;;  %p656_p6 = por %p809_p4, %p60_p3 }
   0xd   : > { %p84_p7 = scmp.eq.s32.totalorder %s632_s13, 3  ;;  %p90_p8 = scmp.eq.s32.totalorder %s370_s14, 3 }
   0xe   : > { %s815_s20 = scalar_select %p656_p6, 1, 0 }
   0xf   : > { %p371_p9 = scmp.ge.s32.totalorder %s587_s12, 1  ;;  %p97_p10 = scmp.lt.s32.totalorder %s587_s12, 5 }
  0x10   : > { %p663_p11 = por %p84_p7, %p54_p0  ;;  %p667_p12 = por %p90_p8, %p60_p3 }
  0x11   : > { %p671_p13 = pnand %p371_p9, %p97_p10  ;;  %s589_s24 = smov [#allocation2]  }
  0x12   : > { %s816_s21 = scalar_select %p663_p11, 1, 0 }
  0x13   : > { %s817_s22 = scalar_select %p667_p12, 1, 0 }
  0x14   : > { %s818_s23 = scalar_select %p671_p13, 1, 0 }
  0x15   : > { %p406_p1 = pneg %p671_p13  ;;  %s110_s25 = sshll.u32 %s589_s24, 4  ;;  %s111_s25 = int_to_ptr.vmem [resolvable:$true] %s110_s25 }
  0x16   : > { %p419_p2 = scmp.lt.s32.totalorder %s587_s12, 4  ;;  %s121_s27 = sand.u32 1, %s583_s11  }
  0x17   : > { %p680_p0 = pnand %p406_p1, %p809_p4  ;;  %s374_s29 = sshll.u32 %s121_s27, 6 }
  0x18   : > { %p687_p3 = pnand %p419_p2, %p650_p5  ;;  %s459_s4 = scalar_lea.hbm %s806_s0, 32 }
  0x19   : > { %p460_p7 = scmp.ne.s32.totalorder %s806_s0, %s459_s4  ;;  %p461_p8 = pneg %p680_p0 }
  0x1a   : > { %s820_s28 = scalar_select %p687_p3, 1, 0 }
  0x1b   : > { %p462_p9 = pnand %p461_p8, %p460_p7  ;;  %p466_p5 = scmp.lt.u32.totalorder %s459_s4, %s806_s0 }
  0x1d   : > { %p463_p10 = pneg %p462_p9 }
  0x1f   : > { %p468_p1 = pnand %p466_p5, %p463_p10 }
  0x21   : > { %471 = shalt.err (!%p468_p1)
}
  0x22   : > { %s472_s14 = scalar_lea.vmem %s111_s25, 32  ;;  %p480_p11 = scmp.lt.s32.totalorder %s111_s25, %s111_s25 }
  0x23   : > { %p473_p2 = scmp.ne.s32.totalorder %s111_s25, %s472_s14  ;;  %p481_p6 = scmp.lt.s32.totalorder %s472_s14, %s472_s14 }
  0x25   : > { %p475_p4 = pnand %p473_p2, %p461_p8  ;;  %p482_p13 = por %p481_p6, %p480_p11 }
  0x27   : > { %p476_p12 = pneg %p475_p4 }
  0x29   : > { %p483_p3 = pnand %p482_p13, %p476_p12 }
  0x2b   : > { %486 = shalt.err (!%p483_p3)
}
  0x2c   : > { %409 = dma.hbm_to_vmem [thread:$0]  (!%p680_p0), %s806_s0, 32, %s111_s25, [#allocation3]  }
  0x2d   : > { %s388_s19 = sshll.u32 %s587_s12, 8  ;;  %s125_s24 = scalar_lea.vmem [#allocation5], %s374_s29 }
  0x2e   : > { %s132_s30 = sshll.u32 %s125_s24, 4  ;;  %s711_s5 = scalar_lea.hbm %s807_s1, %s388_s19  ;;  %s713_s30 = int_to_ptr.vmem [resolvable:$true] %s132_s30 }
  0x2f   : > { %s715_s26 = scalar_lea.sflag [#allocation6], %s121_s27  ;;  %s487_s6 = scalar_lea.hbm %s711_s5, 1024 }
  0x30   : > { %p488_p4 = scmp.ne.s32.totalorder %s711_s5, %s487_s6  ;;  %p821_p6 = scmp.ne.s32.totalorder %s820_s28, 0 }
  0x31   : > { %s492_s7 = scalar_lea.hbm %s807_s1, 4096  ;;  %p493_p0 = scmp.lt.u32.totalorder %s711_s5, %s807_s1 }
  0x32   : > { %p489_p11 = pneg %p821_p6  ;;  %p494_p3 = scmp.lt.u32.totalorder %s492_s7, %s487_s6 }
  0x33   : > { %p496_p8 = scmp.lt.u32.totalorder %s487_s6, %s711_s5 }
  0x34   : > { %p490_p12 = pnand %p489_p11, %p488_p4  ;;  %p495_p7 = por %p494_p3, %p493_p0 }
  0x36   : > { %p491_p13 = pneg %p490_p12  ;;  %p497_p9 = por %p496_p8, %p495_p7 }
  0x38   : > { %p498_p10 = pnand %p497_p9, %p491_p13 }
  0x3a   : > { %501 = shalt.err (!%p498_p10)
}
  0x3b   : > { %s502_s27 = scalar_lea.vmem %s713_s30, 1024  ;;  %s590_s16 = smov [#allocation5]  }
  0x3c   : > { %p503_p5 = scmp.ne.s32.totalorder %s713_s30, %s502_s27  ;;  %s507_s17 = sshll.u32 %s590_s16, 4  ;;  %s508_s17 = int_to_ptr.vmem [resolvable:$false] %s507_s17 }
  0x3d   : > { %s509_s19 = scalar_lea.vmem %s508_s17, 2048  ;;  %p510_p4 = scmp.lt.s32.totalorder %s713_s30, %s508_s17 }
  0x3e   : > { %p505_p1 = pnand %p503_p5, %p489_p11  ;;  %p511_p12 = scmp.lt.s32.totalorder %s509_s19, %s502_s27 }
  0x40   : > { %p506_p2 = pneg %p505_p1  ;;  %p512_p0 = por %p511_p12, %p510_p4 }
  0x42   : > { %p513_p3 = pnand %p512_p0, %p506_p2 }
  0x44   : > { %516 = shalt.err (!%p513_p3)
}
  0x45   : > { %s591_s24 = smov 1024   ;;  %s592_s3 = smov 256  }
  0x46   : > { %s593_s4 = smov 16   ;;  %p822_p11 = scmp.ne.s32.totalorder %s818_s23, 0 }
  0x47   : > { %413 = dma.hbm_to_vmem [thread:$0]  (!%p821_p6), %s711_s5, 1024, %s713_s30, %s715_s26, %s591_s24, %s592_s3, %s593_s4  }
  0x48   : > { %144 = sbr.rel (%p822_p11) target bundleno = 324 (0x144), region = 28  ;;  %p823_p13 = scmp.eq.s32.totalorder (!%p822_p11), %s632_s13, 0 }
  0x4f   : > { %562 = dma.done.wait (%p823_p13), [#allocation3], 32   ;;  %p824_p7 = pmov %p823_p13 }
  0x50   : > { %s750_s6 = sand.u32 1, %s579_s10   ;;  %p825_p8 = scmp.ne.s32.totalorder %s815_s20, 0 }
  0x51   : > { %564 = vsyncadd (%p824_p7), [#allocation3], 4294967264  ;;  %s379_s25 = sshll.u32 %s750_s6, 6  ;;  %s151_s29 = scalar_lea.sflag [#allocation6], %s750_s6 }
  0x52   : > { %s154_s7 = scalar_lea.vmem [#allocation5], %s379_s25 }
  0x53   : > { %566 = dma.done.wait (%p825_p8), %s151_s29, 1024  }
  0x54   : > { %568 = vsyncadd (%p825_p8), %s151_s29, 4294966272  ;;  %v594_v0 = vmov 0.0   ;;  %v179_v1 = vld [vmem:[%s154_s7 + $0x8] sm:$0xff]  ;;  %v181_v2 = vld [vmem:[%s154_s7 + $0x18] sm:$0xff]  ;;  %vm186_vm0 = vcmask 261120   ;;  %s380_s20 = sshll.u32 %s750_s6, 2 }
  0x55   : > { %254 = vmatprep.mubr.f32.mxu0 %v594_v0  ;;  %v178_v3 = vld [vmem:[%s154_s7] sm:$0xff]  ;;  %v390_v4 = vpack.c.bf16 %v181_v2, %v179_v1  ;;  %v180_v5 = vld [vmem:[%s154_s7 + $0x10] sm:$0xff]  ;;  %v183_v6 = vld [vmem:[%s154_s7 + $0x28] sm:$0xff]  ;;  %s389_s23 = sshll.u32 %s632_s13, 6  ;;  %s174_s28 = scalar_lea.vmem [#allocation7], %s380_s20 }
  0x56   : > { %v185_v7 = vld [vmem:[%s154_s7 + $0x38] sm:$0xff]  ;;  %v392_v8 = vpack.c.bf16 %v180_v5, %v178_v3  ;;  %v182_v10 = vld [vmem:[%s154_s7 + $0x20] sm:$0xff]  ;;  %v184_v11 = vld [vmem:[%s154_s7 + $0x30] sm:$0xff]  ;;  %s288_s30 = sshll.u32 %s174_s28, 4  ;;  %s763_s8 = scalar_lea.hbm %s808_s2, %s389_s23  ;;  %s765_s30 = int_to_ptr.vmem [resolvable:$true] %s288_s30 }
  0x57   : > { %v394_v9 = vpack.c.bf16 %v185_v7, %v183_v6  ;;  %391 = vmatprep.subr.bf16.mxu0 %v390_v4  ;;  %v396_v12 = vpack.c.bf16 %v184_v11, %v182_v10  ;;  %v177_v13 = vld [vmem:[#allocation2] sm:$0x3]  ;;  %s274_s14 = scalar_lea.sflag [#allocation4], %s750_s6  ;;  %s517_s27 = scalar_lea.vmem %s765_s30, 64 }
  0x58   : > { %393 = vmatpush1.bf16.msra.mxu0 %v392_v8  ;;  %p518_p6 = scmp.ne.s32.totalorder %s765_s30, %s517_s27  ;;  %p826_p9 = scmp.ne.s32.totalorder %s816_s21, 0 }
  0x59   : > { %395 = vmatprep.subr.bf16.mxu0 %v394_v9  ;;  %s595_s13 = smov [#allocation7]  }
  0x5a   : > { %p519_p10 = pnand %p518_p6, %p826_p9  ;;  %s521_s16 = sshll.u32 %s595_s13, 4  ;;  %s522_s16 = int_to_ptr.vmem [resolvable:$false] %s521_s16 }
  0x5b   : > { %s523_s17 = scalar_lea.vmem %s522_s16, 128  ;;  %p524_p1 = scmp.lt.s32.totalorder %s765_s30, %s522_s16 }
  0x5c   : > { %397 = vmatpush1.bf16.msra.mxu0 %v396_v12  ;;  %p520_p5 = pneg %p519_p10  ;;  %p525_p2 = scmp.lt.s32.totalorder %s523_s17, %s517_s27 }
  0x5e   : > { %p526_p4 = por %p525_p2, %p524_p1 }
  0x5f   : > { %381 = vmatmul.mubr.msk.f32.vlgmr.msra.gmra.mrb[0].mxu0 %vm186_vm0, %v177_v13 }
  0x60   : > { %p527_p12 = pnand %p526_p4, %p520_p5 }
 0x132   : > { %v256_v14 = vpop.f32.mrb[0].mxu0 }
 0x133   : > { %v258_v15 = vpop.f32.mrb[1].mxu0 }
 0x134   : > { %v263_v16 = vcombine.low %v256_v14, %v258_v15 }
 0x136   : > { %382 = vst.sshfl [vmem:[%s174_s28] sm:$0x33 pattern:$0x76325410] %v263_v16 }
 0x137   : > { %530 = shalt.err (!%p527_p12)
}
 0x138   : > { %s531_s19 = scalar_lea.hbm %s763_s8, 64  ;;  %s535_s4 = scalar_lea.hbm %s808_s2, 256 }
 0x139   : > { %p532_p0 = scmp.ne.s32.totalorder %s763_s8, %s531_s19  ;;  %p536_p13 = scmp.lt.u32.totalorder %s763_s8, %s808_s2 }
 0x13a   : > { %p537_p7 = scmp.lt.u32.totalorder %s535_s4, %s531_s19  ;;  %p539_p6 = scmp.lt.u32.totalorder %s531_s19, %s763_s8 }
 0x13b   : > { %p533_p3 = pnand %p532_p0, %p826_p9 }
 0x13c   : > { %p538_p8 = por %p537_p7, %p536_p13 }
 0x13d   : > { %p534_p11 = pneg %p533_p3 }
 0x13e   : > { %p540_p10 = por %p539_p6, %p538_p8 }
 0x140   : > { %p541_p5 = pnand %p540_p10, %p534_p11 }
 0x142   : > { %544 = shalt.err (!%p541_p5)
}
 0x143   : > { %404 = dma.vmem_to_hbm [thread:$0]  (%p826_p9), %s765_s30, 64, %s763_s8, %s274_s14  }
 0x144 PF: > { %p421_p1 = scmp.ge.s32.totalorder %s587_s12, 2  ;;  %s300_s29 = sand.u32 1, %s575_s9  }
 0x145   : > { %p827_p2 = scmp.ne.s32.totalorder %s817_s22, 0  ;;  %s301_s7 = scalar_lea.sflag [#allocation4], %s300_s29 }
 0x147   : > { %p415_p4 = pnand %p421_p1, %p827_p2 }
 0x149   : > { %570 = dma.done.wait (!%p415_p4), %s301_s7, 64  }
 0x14a   : > { %572 = vsyncadd (!%p415_p4), %s301_s7, 4294967232  ;;  %p16_p12 = scmp.ge.s32.totalorder %s636_s15, 6   ;;  %s828_s9 = smov %s579_s10 }
 0x14b   : > { %s829_s10 = smov %s583_s11  ;;  %s830_s11 = smov %s648_s18 }
 0x14c   : > { %s831_s12 = smov %s636_s15  ;;  %18 = sbr.rel (!%p16_p12) target bundleno = 6 (0x6), region = 78 }
 0x153   :  { %306 = vsyncpa [#allocation3], 1 }
 0x154   :  { %308 = vsyncpa [#allocation3 + $0x1], 1 }
 0x155   :  { %309 = vsyncpa [#allocation6], 1 }
 0x156   :  { %311 = vsyncpa [#allocation6 + $0x1], 1 }
 0x157   :  { %312 = vsyncpa [#allocation4], 1 }
 0x158   :  { %314 = vsyncpa [#allocation4 + $0x1], 1 }

</bundles_post_ra>
